<compile_context>
chip_gen: v5e
topology: v5e:2x2
jax: 0.10.0
libtpu: 0.0.40
codegen_flags: <defaults>
</compile_context>

<pallas_src>
import jax
import jax.numpy as jnp
from jax.experimental import pallas as pl
from jax.experimental.pallas import tpu as pltpu


def _make_conv_kernel(nb, kh, kw, wp, lw):
    """Build the per-grid-step kernel.

    x_ref : (nb, C_in, Lf)        flattened zero-padded images, Lf = (Hp+1)*Wp
    w_ref : (kh*kw, C_out, C_in)  per-tap weight matrices (resident)
    b_ref : (C_out, 1)            bias column (resident)
    o_ref : (nb, C_out, Lw)       stride-1 "wide" output rows, Lw = h_wide*Wp
    """

    def kernel(x_ref, w_ref, b_ref, o_ref):
        bias = b_ref[...].astype(jnp.float32)                 # (C_out, 1)
        for m in range(nb):                                    # static batch fold
            acc = None
            for i in range(kh):
                for j in range(kw):
                    t = i * kw + j
                    off = i * wp + j                           # static lane offset
                    xt = x_ref[m, :, pl.ds(off, lw)]           # (C_in, Lw) contiguous
                    wt = w_ref[t]                              # (C_out, C_in)
                    d = jnp.dot(wt, xt, preferred_element_type=jnp.float32)
                    acc = d if acc is None else acc + d
            o_ref[m] = (acc + bias).astype(o_ref.dtype)

    return kernel


def _pick_batch_block(n, c_in, c_out, lf, lw):
    """Images per grid step: amortize ~0.35us step cost, respect VMEM + 2-TC split."""
    per_img_bytes = 4 * (2 * c_in * lf + 3 * c_out * lw)   # dbl-buf in/out + f32 acc
    budget = 6 << 20                                        # safe under v5e 16 MiB scoped
    target_lanes = 8192
    nb = max(1, min(n, -(-target_lanes // lw), max(1, budget // per_img_bytes)))
    if n >= 2:
        nb = max(1, min(nb, n // 2))                        # keep >=2 parallel steps (v7x)
    while n % nb:                                           # avoid a remainder step
        nb -= 1
    return nb


def custom_conv2d(x_nchw, weight_oihw, bias=None, *, stride=1, padding=0):
    """Forward pass equivalent to F.conv2d(x, weight, bias, stride, padding).

    x_nchw:      (N, C_in, H, W)
    weight_oihw: (C_out, C_in, kH, kW)
    bias:        (C_out,) or None
    returns:     (N, C_out, H_out, W_out)
    """
    n, c_in, h, w = x_nchw.shape
    c_out, c_in_w, kh, kw = weight_oihw.shape
    assert c_in == c_in_w

    h_out = (h + 2 * padding - kh) // stride + 1
    w_out = (w + 2 * padding - kw) // stride + 1
    hp = h + 2 * padding
    wp = w + 2 * padding
    h_wide = hp - kh + 1          # stride-1 "wide" output rows
    lw = h_wide * wp              # GEMM lane width per image
    lf = (hp + 1) * wp            # flat padded image + 1 extra zero row (tap overhang)

    # --- glue: zero-pad once (1x input traffic), flatten rows; NO im2col ---
    x_pad = jnp.pad(
        x_nchw, ((0, 0), (0, 0), (padding, padding + 1), (padding, padding))
    )
    x_flat = x_pad.reshape(n, c_in, lf)

    # Per-tap weight matrices: w_taps[i*kw + j] == weight[:, :, i, j].
    w_taps = jnp.transpose(weight_oihw, (2, 3, 0, 1)).reshape(kh * kw, c_out, c_in)

    if bias is None:
        bias = jnp.zeros((c_out,), dtype=x_nchw.dtype)
    b_col = bias.reshape(c_out, 1)

    nb = _pick_batch_block(n, c_in, c_out, lf, lw)
    kernel = _make_conv_kernel(nb, kh, kw, wp, lw)

    out_wide = pl.pallas_call(
        kernel,
        out_shape=jax.ShapeDtypeStruct((n, c_out, lw), x_nchw.dtype),
        grid_spec=pltpu.PrefetchScalarGridSpec(
            num_scalar_prefetch=0,
            grid=(n // nb,),
            in_specs=[
                pl.BlockSpec((nb, c_in, lf), lambda b: (b, 0, 0)),
                pl.BlockSpec((kh * kw, c_out, c_in), lambda b: (0, 0, 0)),
                pl.BlockSpec((c_out, 1), lambda b: (0, 0)),
            ],
            out_specs=pl.BlockSpec((nb, c_out, lw), lambda b: (b, 0, 0)),
        ),
        compiler_params=pltpu.CompilerParams(
            dimension_semantics=("parallel",)
        ),
    )(x_flat, w_taps, b_col)

    # Wide stride-1 rows -> (N, C_out, h_wide, Wp); pick the valid strided
    # output positions (tiny, output-sized slice; no expanded-array copies).
    wide4 = out_wide.reshape(n, c_out, h_wide, wp)
    out = wide4[
        :, :,
        : (h_out - 1) * stride + 1 : stride,
        : (w_out - 1) * stride + 1 : stride,
    ]
    return out


if __name__ == "__main__":
    # Module config: CustomConv2d(in_channels=4, out_channels=8, kernel_size=3,
    # stride=1, padding=1, bias=True)
    in_channels, out_channels, kernel_size = 4, 8, 3
    stride, padding = 1, 1
    N, H, W = 2, 16, 16

    key = jax.random.PRNGKey(0)
    kx, kw_ = jax.random.split(key)

    x = jax.random.normal(kx, (N, in_channels, H, W), dtype=jnp.float32)
    # torch.randn(...) * 0.1 -> deterministic JAX equivalent
    weight = jax.random.normal(
        kw_, (out_channels, in_channels, kernel_size, kernel_size),
        dtype=jnp.float32,
    ) * 0.1
    bias = jnp.zeros((out_channels,), dtype=jnp.float32)  # torch.zeros(out_channels)

    out = custom_conv2d(x, weight, bias, stride=stride, padding=padding)
    out = jax.block_until_ready(out)

    # Reference check against XLA's conv (same semantics as F.conv2d).
    ref = jax.lax.conv_general_dilated(
        x, weight, window_strides=(stride, stride),
        padding=[(padding, padding), (padding, padding)],
        dimension_numbers=("NCHW", "OIHW", "NCHW"),
    ) + bias[None, :, None, None]

    assert out.shape == (N, out_channels, H, W), out.shape
    assert jnp.allclose(out, ref, rtol=1e-4, atol=1e-4)

    print("KERNEL_OK")
</pallas_src>

<mosaic_0001>
module attributes {stable_mosaic.version = 11 : i64} {
  func.func @kernel(%arg0: i32, %arg1: memref<1x4x342xf32, #tpu.memory_space<vmem>>, %arg2: memref<9x8x4xf32, #tpu.memory_space<vmem>>, %arg3: memref<8x1xf32, #tpu.memory_space<vmem>>, %arg4: memref<1x8x288xf32, #tpu.memory_space<vmem>>) attributes {dimension_semantics = [#tpu.dimension_semantics<parallel>], iteration_bounds = array<i64: 2>, scalar_prefetch = 0 : i64, scratch_operands = 0 : i64, tpu.core_type = #tpu.core_type<tc>, window_params = [{transform_indices = @transform_0, window_bounds = array<i64: 1, 4, 342>}, {pipeline_mode = #tpu.pipeline_mode<synchronous>, transform_indices = @transform_1, window_bounds = array<i64: 9, 8, 4>}, {pipeline_mode = #tpu.pipeline_mode<synchronous>, transform_indices = @transform_2, window_bounds = array<i64: 8, 1>}, {transform_indices = @transform_3, window_bounds = array<i64: 1, 8, 288>}]} {
    %c0 = arith.constant 0 : index
    %c0_0 = arith.constant 0 : index
    %0 = vector.load %arg3[%c0, %c0_0] : memref<8x1xf32, #tpu.memory_space<vmem>>, vector<8x1xf32>
    %c0_1 = arith.constant 0 : index
    %c0_2 = arith.constant 0 : index
    %c0_3 = arith.constant 0 : index
    %1 = vector.load %arg1[%c0_1, %c0_2, %c0_3] : memref<1x4x342xf32, #tpu.memory_space<vmem>>, vector<1x4x288xf32>
    %2 = vector.shape_cast %1 : vector<1x4x288xf32> to vector<4x288xf32>
    %c0_4 = arith.constant 0 : index
    %c0_5 = arith.constant 0 : index
    %c0_6 = arith.constant 0 : index
    %3 = vector.load %arg2[%c0_4, %c0_5, %c0_6] : memref<9x8x4xf32, #tpu.memory_space<vmem>>, vector<1x8x4xf32>
    %4 = vector.shape_cast %3 : vector<1x8x4xf32> to vector<8x4xf32>
    %cst = arith.constant dense<0.000000e+00> : vector<8x288xf32>
    %5 = tpu.matmul %4, %2, %cst {dimension_numbers = #tpu.dot_dimension_numbers<[1], [0], [0], [1], [0, 0, 1, 1], [], []>} : vector<8x4xf32>, vector<4x288xf32>, vector<8x288xf32> -> vector<8x288xf32>
    %c0_7 = arith.constant 0 : index
    %c0_8 = arith.constant 0 : index
    %c1 = arith.constant 1 : index
    %6 = vector.load %arg1[%c0_7, %c0_8, %c1] : memref<1x4x342xf32, #tpu.memory_space<vmem>>, vector<1x4x288xf32>
    %7 = vector.shape_cast %6 : vector<1x4x288xf32> to vector<4x288xf32>
    %c1_9 = arith.constant 1 : index
    %c0_10 = arith.constant 0 : index
    %c0_11 = arith.constant 0 : index
    %8 = vector.load %arg2[%c1_9, %c0_10, %c0_11] : memref<9x8x4xf32, #tpu.memory_space<vmem>>, vector<1x8x4xf32>
    %9 = vector.shape_cast %8 : vector<1x8x4xf32> to vector<8x4xf32>
    %cst_12 = arith.constant dense<0.000000e+00> : vector<8x288xf32>
    %10 = tpu.matmul %9, %7, %cst_12 {dimension_numbers = #tpu.dot_dimension_numbers<[1], [0], [0], [1], [0, 0, 1, 1], [], []>} : vector<8x4xf32>, vector<4x288xf32>, vector<8x288xf32> -> vector<8x288xf32>
    %11 = arith.addf %5, %10 : vector<8x288xf32>
    %c0_13 = arith.constant 0 : index
    %c0_14 = arith.constant 0 : index
    %c2 = arith.constant 2 : index
    %12 = vector.load %arg1[%c0_13, %c0_14, %c2] : memref<1x4x342xf32, #tpu.memory_space<vmem>>, vector<1x4x288xf32>
    %13 = vector.shape_cast %12 : vector<1x4x288xf32> to vector<4x288xf32>
    %c2_15 = arith.constant 2 : index
    %c0_16 = arith.constant 0 : index
    %c0_17 = arith.constant 0 : index
    %14 = vector.load %arg2[%c2_15, %c0_16, %c0_17] : memref<9x8x4xf32, #tpu.memory_space<vmem>>, vector<1x8x4xf32>
    %15 = vector.shape_cast %14 : vector<1x8x4xf32> to vector<8x4xf32>
    %cst_18 = arith.constant dense<0.000000e+00> : vector<8x288xf32>
    %16 = tpu.matmul %15, %13, %cst_18 {dimension_numbers = #tpu.dot_dimension_numbers<[1], [0], [0], [1], [0, 0, 1, 1], [], []>} : vector<8x4xf32>, vector<4x288xf32>, vector<8x288xf32> -> vector<8x288xf32>
    %17 = arith.addf %11, %16 : vector<8x288xf32>
    %c0_19 = arith.constant 0 : index
    %c0_20 = arith.constant 0 : index
    %c18 = arith.constant 18 : index
    %18 = vector.load %arg1[%c0_19, %c0_20, %c18] : memref<1x4x342xf32, #tpu.memory_space<vmem>>, vector<1x4x288xf32>
    %19 = vector.shape_cast %18 : vector<1x4x288xf32> to vector<4x288xf32>
    %c3 = arith.constant 3 : index
    %c0_21 = arith.constant 0 : index
    %c0_22 = arith.constant 0 : index
    %20 = vector.load %arg2[%c3, %c0_21, %c0_22] : memref<9x8x4xf32, #tpu.memory_space<vmem>>, vector<1x8x4xf32>
    %21 = vector.shape_cast %20 : vector<1x8x4xf32> to vector<8x4xf32>
    %cst_23 = arith.constant dense<0.000000e+00> : vector<8x288xf32>
    %22 = tpu.matmul %21, %19, %cst_23 {dimension_numbers = #tpu.dot_dimension_numbers<[1], [0], [0], [1], [0, 0, 1, 1], [], []>} : vector<8x4xf32>, vector<4x288xf32>, vector<8x288xf32> -> vector<8x288xf32>
    %23 = arith.addf %17, %22 : vector<8x288xf32>
    %c0_24 = arith.constant 0 : index
    %c0_25 = arith.constant 0 : index
    %c19 = arith.constant 19 : index
    %24 = vector.load %arg1[%c0_24, %c0_25, %c19] : memref<1x4x342xf32, #tpu.memory_space<vmem>>, vector<1x4x288xf32>
    %25 = vector.shape_cast %24 : vector<1x4x288xf32> to vector<4x288xf32>
    %c4 = arith.constant 4 : index
    %c0_26 = arith.constant 0 : index
    %c0_27 = arith.constant 0 : index
    %26 = vector.load %arg2[%c4, %c0_26, %c0_27] : memref<9x8x4xf32, #tpu.memory_space<vmem>>, vector<1x8x4xf32>
    %27 = vector.shape_cast %26 : vector<1x8x4xf32> to vector<8x4xf32>
    %cst_28 = arith.constant dense<0.000000e+00> : vector<8x288xf32>
    %28 = tpu.matmul %27, %25, %cst_28 {dimension_numbers = #tpu.dot_dimension_numbers<[1], [0], [0], [1], [0, 0, 1, 1], [], []>} : vector<8x4xf32>, vector<4x288xf32>, vector<8x288xf32> -> vector<8x288xf32>
    %29 = arith.addf %23, %28 : vector<8x288xf32>
    %c0_29 = arith.constant 0 : index
    %c0_30 = arith.constant 0 : index
    %c20 = arith.constant 20 : index
    %30 = vector.load %arg1[%c0_29, %c0_30, %c20] : memref<1x4x342xf32, #tpu.memory_space<vmem>>, vector<1x4x288xf32>
    %31 = vector.shape_cast %30 : vector<1x4x288xf32> to vector<4x288xf32>
    %c5 = arith.constant 5 : index
    %c0_31 = arith.constant 0 : index
    %c0_32 = arith.constant 0 : index
    %32 = vector.load %arg2[%c5, %c0_31, %c0_32] : memref<9x8x4xf32, #tpu.memory_space<vmem>>, vector<1x8x4xf32>
    %33 = vector.shape_cast %32 : vector<1x8x4xf32> to vector<8x4xf32>
    %cst_33 = arith.constant dense<0.000000e+00> : vector<8x288xf32>
    %34 = tpu.matmul %33, %31, %cst_33 {dimension_numbers = #tpu.dot_dimension_numbers<[1], [0], [0], [1], [0, 0, 1, 1], [], []>} : vector<8x4xf32>, vector<4x288xf32>, vector<8x288xf32> -> vector<8x288xf32>
    %35 = arith.addf %29, %34 : vector<8x288xf32>
    %c0_34 = arith.constant 0 : index
    %c0_35 = arith.constant 0 : index
    %c36 = arith.constant 36 : index
    %36 = vector.load %arg1[%c0_34, %c0_35, %c36] : memref<1x4x342xf32, #tpu.memory_space<vmem>>, vector<1x4x288xf32>
    %37 = vector.shape_cast %36 : vector<1x4x288xf32> to vector<4x288xf32>
    %c6 = arith.constant 6 : index
    %c0_36 = arith.constant 0 : index
    %c0_37 = arith.constant 0 : index
    %38 = vector.load %arg2[%c6, %c0_36, %c0_37] : memref<9x8x4xf32, #tpu.memory_space<vmem>>, vector<1x8x4xf32>
    %39 = vector.shape_cast %38 : vector<1x8x4xf32> to vector<8x4xf32>
    %cst_38 = arith.constant dense<0.000000e+00> : vector<8x288xf32>
    %40 = tpu.matmul %39, %37, %cst_38 {dimension_numbers = #tpu.dot_dimension_numbers<[1], [0], [0], [1], [0, 0, 1, 1], [], []>} : vector<8x4xf32>, vector<4x288xf32>, vector<8x288xf32> -> vector<8x288xf32>
    %41 = arith.addf %35, %40 : vector<8x288xf32>
    %c0_39 = arith.constant 0 : index
    %c0_40 = arith.constant 0 : index
    %c37 = arith.constant 37 : index
    %42 = vector.load %arg1[%c0_39, %c0_40, %c37] : memref<1x4x342xf32, #tpu.memory_space<vmem>>, vector<1x4x288xf32>
    %43 = vector.shape_cast %42 : vector<1x4x288xf32> to vector<4x288xf32>
    %c7 = arith.constant 7 : index
    %c0_41 = arith.constant 0 : index
    %c0_42 = arith.constant 0 : index
    %44 = vector.load %arg2[%c7, %c0_41, %c0_42] : memref<9x8x4xf32, #tpu.memory_space<vmem>>, vector<1x8x4xf32>
    %45 = vector.shape_cast %44 : vector<1x8x4xf32> to vector<8x4xf32>
    %cst_43 = arith.constant dense<0.000000e+00> : vector<8x288xf32>
    %46 = tpu.matmul %45, %43, %cst_43 {dimension_numbers = #tpu.dot_dimension_numbers<[1], [0], [0], [1], [0, 0, 1, 1], [], []>} : vector<8x4xf32>, vector<4x288xf32>, vector<8x288xf32> -> vector<8x288xf32>
    %47 = arith.addf %41, %46 : vector<8x288xf32>
    %c0_44 = arith.constant 0 : index
    %c0_45 = arith.constant 0 : index
    %c38 = arith.constant 38 : index
    %48 = vector.load %arg1[%c0_44, %c0_45, %c38] : memref<1x4x342xf32, #tpu.memory_space<vmem>>, vector<1x4x288xf32>
    %49 = vector.shape_cast %48 : vector<1x4x288xf32> to vector<4x288xf32>
    %c8 = arith.constant 8 : index
    %c0_46 = arith.constant 0 : index
    %c0_47 = arith.constant 0 : index
    %50 = vector.load %arg2[%c8, %c0_46, %c0_47] : memref<9x8x4xf32, #tpu.memory_space<vmem>>, vector<1x8x4xf32>
    %51 = vector.shape_cast %50 : vector<1x8x4xf32> to vector<8x4xf32>
    %cst_48 = arith.constant dense<0.000000e+00> : vector<8x288xf32>
    %52 = tpu.matmul %51, %49, %cst_48 {dimension_numbers = #tpu.dot_dimension_numbers<[1], [0], [0], [1], [0, 0, 1, 1], [], []>} : vector<8x4xf32>, vector<4x288xf32>, vector<8x288xf32> -> vector<8x288xf32>
    %53 = arith.addf %47, %52 : vector<8x288xf32>
    %54 = vector.broadcast %0 : vector<8x1xf32> to vector<8x288xf32>
    %55 = arith.addf %53, %54 : vector<8x288xf32>
    %c0_49 = arith.constant 0 : index
    %c0_50 = arith.constant 0 : index
    %c0_51 = arith.constant 0 : index
    %56 = vector.load %arg4[%c0_49, %c0_50, %c0_51] : memref<1x8x288xf32, #tpu.memory_space<vmem>>, vector<1x8x288xf32>
    %57 = vector.shape_cast %56 : vector<1x8x288xf32> to vector<8x288xf32>
    %58 = vector.shape_cast %55 : vector<8x288xf32> to vector<1x8x288xf32>
    tpu.vector_store %arg4[%c0_49, %c0_50, %c0_51], %58 {strides = array<i32>} : memref<1x8x288xf32, #tpu.memory_space<vmem>>, vector<1x8x288xf32>,
    return
  }
  func.func @transform_0(%arg0: i32) -> (i32, i32, i32) {
    %c0_i32 = arith.constant 0 : i32
    %c0_i32_0 = arith.constant 0 : i32
    %c0_i32_1 = arith.constant 0 : i32
    return %arg0, %c0_i32, %c0_i32_0 : i32, i32, i32
  }
  func.func @transform_1(%arg0: i32) -> (i32, i32, i32) {
    %c0_i32 = arith.constant 0 : i32
    %c0_i32_0 = arith.constant 0 : i32
    %c0_i32_1 = arith.constant 0 : i32
    %c0_i32_2 = arith.constant 0 : i32
    return %c0_i32, %c0_i32_0, %c0_i32_1 : i32, i32, i32
  }
  func.func @transform_2(%arg0: i32) -> (i32, i32) {
    %c0_i32 = arith.constant 0 : i32
    %c0_i32_0 = arith.constant 0 : i32
    %c0_i32_1 = arith.constant 0 : i32
    return %c0_i32, %c0_i32_0 : i32, i32
  }
  func.func @transform_3(%arg0: i32) -> (i32, i32, i32) {
    %c0_i32 = arith.constant 0 : i32
    %c0_i32_0 = arith.constant 0 : i32
    %c0_i32_1 = arith.constant 0 : i32
    return %arg0, %c0_i32, %c0_i32_0 : i32, i32, i32
  }
}

</mosaic_0001>

<bundles_post_ra>
// kernel: tpu_custom_call.1
= control target key start
LH: loop header
LB: loop body
LE: loop exit
PB: predicated region body
PF: predicated region fallthrough
CT: control target
= control target key end

     0   :  { %8 = vsyncpa [#allocation3], 0  ;;  %s1500_s0 = inlined_call_operand.vmem [shape: f32[2,4,342], index: 0, kind: input, shape index: {}]   ;;  %s1501_s1 = inlined_call_operand.vmem [shape: f32[9,8,4], index: 1, kind: input, shape index: {}]   ;;  %s1502_s2 = inlined_call_operand.vmem [shape: f32[8,1], index: 2, kind: input, shape index: {}]   ;;  %s1503_s3 = inlined_call_operand.hbm [shape: f32[2,8,288], index: 3, kind: output, shape index: {}]  }
   0x1   :  { %10 = vsyncpa [#allocation3 + $0x1], 0  ;;  %s1292_s12 = smov 0   ;;  %s1294_s13 = smov 0  }
   0x2   :  { %s1296_s14 = smov 0   ;;  %s1298_s15 = smov 0  }
   0x3 LB: > { %s1313_s16 = sadd.s32 4294967295, %s1261_s15   ;;  %s1077_s17 = sadd.s32 4294967294, %s1261_s15   ;;  %s1261_s15 = sphi %s1298_s15, %s1509_s15   ;;  %s1257_s14 = sphi %s1296_s14, %s1508_s14   ;;  %s1253_s13 = sphi %s1294_s13, %s1507_s13   ;;  %s1249_s12 = sphi %s1292_s12, %s1506_s12  }
   0x4   : > { %s1317_s18 = sadd.s32 1, %s1261_s15   ;;  %s91_s19 = sadd.s32 1, %s1257_s14 }
   0x5   : > { %s88_s20 = ssub.s32 %s1261_s15, %s1317_s18  ;;  %p101_p0 = scmp.ne.s32.totalorder %s1257_s14, %s1253_s13 }
   0x6   : > { %p89_p1 = scmp.eq.s32.totalorder %s88_s20, 0  ;;  %p102_p2 = scmp.eq.s32.totalorder %s1313_s16, 1 }
   0x7   : > { %p107_p3 = scmp.ne.s32.totalorder %s1253_s13, %s1249_s12  ;;  %p108_p4 = scmp.eq.s32.totalorder %s1077_s17, 1 }
   0x8   : > { %s1328_s21 = scalar_select %p89_p1, %s1257_s14, %s91_s19  }
   0x9   : > { %p1330_p5 = por %p102_p2, %p101_p0  ;;  %p1334_p6 = por %p108_p4, %p107_p3 }
   0xa   : > { %p1080_p7 = scmp.ge.s32.totalorder %s1261_s15, 1  ;;  %p140_p8 = scmp.lt.s32.totalorder %s1261_s15, 3 }
   0xc   : > { %p141_p9 = pnand %p1080_p7, %p140_p8 }
   0xd   : > { %p164_p10 = scmp.lt.s32.totalorder (!%p141_p9), %s1313_s16, 1  ;;  %s1263_s29 = smov (!%p141_p9), 127  }
   0xe   : > { %144 = sbr.rel (%p141_p9) target bundleno = 356 (0x164), region = 32  ;;  %s1264_s30 = smov (!%p141_p9), 126  }
   0xf   : > { %s1265_s4 = smov (!%p141_p9), 110   ;;  %s1266_s5 = smov (!%p141_p9), 109  }
  0x10   : > { %s1267_s6 = smov (!%p141_p9), 108   ;;  %s1268_s7 = smov (!%p141_p9), 92  }
  0x11   : > { %s1269_s8 = smov (!%p141_p9), 91   ;;  %s1270_s9 = smov (!%p141_p9), 90  }
  0x12   : > { %s161_s17 = sand.u32 (!%p141_p9), 1, %s1253_s13   ;;  %s1149_s20 = smul.u32 (!%p141_p9), 24, %s1313_s16 }
  0x13   : > { %s165_s24 = scalar_select %p164_p10, %s1313_s16, 1  ;;  %vm196_vm0 = vcmask 1043456   ;;  %vm192_vm1 = vcmask 31744   ;;  %v172_v36 = vld [vmem:[%s1501_s1] sm:$0xff]  ;;  %vm189_vm2 = vcmask 1039360   ;;  %v1082_v38 = vld [vmem:[%s1501_s1 + $0x8] sm:$0xff] }
  0x14   : > { %vm356_vm3 = vcmask 1031168   ;;  %v1095_v43 = vld [vmem:[%s1501_s1 + $0x10] sm:$0xff]  ;;  %vm449_vm4 = vcmask 900096   ;;  %v1102_v53 = vld [vmem:[%s1501_s1 + $0x18] sm:$0xff]  ;;  %vm542_vm5 = vcmask 891904   ;;  %v1109_v59 = vld [vmem:[%s1501_s1 + $0x20] sm:$0xff]  ;;  %s1013_s26 = scalar_lea.hbm %s1503_s3, %s1149_s20 }
  0x15   : > { %s1148_s25 = smul.u32 12, %s165_s24  ;;  %v169_v62 = vld [vmem:[%s1502_s2] sm:$0xff]  ;;  %v1271_v63 = vmov 0   ;;  %vm635_vm6 = vcmask 883712   ;;  %vm728_vm7 = vcmask 752640   ;;  %vm821_vm8 = vcmask 744448  }
  0x16   : > { %1198 = vset.pattern.permute.xlu0 %v1271_v63  ;;  %vm914_vm9 = vcmask 736256   ;;  %s1147_s19 = smul.u32 24, %s161_s17  ;;  %vm999_vm10 = vcmask 261120  }
  0x17   : > { %s1345_s28 = scalar_lea.vmem %s1500_s0, %s1148_s25 }
  0x18   : > { %v171_v0 = vld [vmem:[%s1345_s28 + $0x8] sm:$0xf]  ;;  %v1349_v1 = vld [vmem:[%s1345_s28] sm:$0xff]  ;;  %s163_s27 = scalar_lea.vmem [#allocation2], %s1147_s19 }
  0x19   : > { %179 = vst [vmem:[#allocation1 + $0x10] ss:$2 sm:$0xff] %v171_v0  ;;  %v339_v5 = vld [vmem:[%s1345_s28 + $0x8] sm:$0xf]  ;;  %s1015_s16 = sshll.u32 %s163_s27, 4  ;;  %s1016_s16 = int_to_ptr.vmem [resolvable:$true] %s1015_s16 }
  0x1a   : > { %177 = vst [vmem:[#allocation1] ss:$2 sm:$0xff] %v1349_v1  ;;  %v432_v9 = vld [vmem:[%s1345_s28 + $0x8] sm:$0xf] }
  0x1b   : > { %v525_v13 = vld [vmem:[%s1345_s28 + $0x8] sm:$0xf] }
  0x1c   : > { %v618_v17 = vld [vmem:[%s1345_s28 + $0x8] sm:$0xf] }
  0x1d   : > { %v711_v21 = vld [vmem:[%s1345_s28 + $0x8] sm:$0xf] }
  0x1e   : > { %v804_v25 = vld [vmem:[%s1345_s28 + $0x8] sm:$0xf] }
  0x1f   : > { %v897_v29 = vld [vmem:[%s1345_s28 + $0x8] sm:$0xf]  ;;  %s1017_s28 = sshll.u32 %s1013_s26, 4  ;;  %s1018_s28 = int_to_ptr.hbm [resolvable:$true] %s1017_s28 }
  0x20   : > { %v182_v2 = vld.sshfl [vmem:[#allocation1 + $0x10] sm:$0xff pattern:$0x75316420] }
  0x21   : > { %187 = vrot.lane.b32.xlu0 %v182_v2, %s1263_s29  ;;  %265 = vst [vmem:[#allocation1 + $0x10] ss:$2 sm:$0xff] %v171_v0  ;;  %v181_v3 = vld.sshfl [vmem:[#allocation1 + $0x8] sm:$0xff pattern:$0x75316420] }
  0x22   : > { %185 = vrot.lane.b32.xlu1 %v181_v3, %s1263_s29  ;;  %v180_v4 = vld.sshfl [vmem:[#allocation1] sm:$0xff pattern:$0x75316420]  ;;  %v1116_v2 = vld [vmem:[%s1501_s1 + $0x28] sm:$0xff] }
  0x23   : > { %263 = vst [vmem:[#allocation1] ss:$2 sm:$0xff] %v1349_v1 }
  0x28   : > { %v1354_v6 = vld.sshfl [vmem:[#allocation1 + $0x10] sm:$0xff pattern:$0x75316420] }
  0x29   : > { %183 = vrot.lane.b32.xlu0 %v180_v4, %s1263_s29  ;;  %346 = vst [vmem:[#allocation1 + $0x10] ss:$2 sm:$0xff] %v339_v5  ;;  %s1002_s29 = scalar_lea.sflag [#allocation3], %s161_s17 }
  0x2a   : > { %v1356_v7 = vld.sshfl [vmem:[#allocation1] sm:$0xff pattern:$0x75316420]  ;;  %v1358_v8 = vld.sshfl [vmem:[#allocation1 + $0x8] sm:$0xff pattern:$0x75316420] }
  0x2b   : > { %344 = vst [vmem:[#allocation1] ss:$2 sm:$0xff] %v1349_v1  ;;  %1089 = vmatpush.msk.msra.mxu3 %vm196_vm0, %v1356_v7 }
  0x2c   : > { %1090 = vmatmul.msk.f32.vlgmr.msra.gmra.mxu3 %vm192_vm1, %v172_v36 }
  0x30   : > { %v349_v10 = vld.sshfl [vmem:[#allocation1 + $0x10] sm:$0xff pattern:$0x75316420] }
  0x31   : > { %439 = vst [vmem:[#allocation1 + $0x10] ss:$2 sm:$0xff] %v432_v9 }
  0x32   : > { %v347_v11 = vld.sshfl [vmem:[#allocation1] sm:$0xff pattern:$0x75316420]  ;;  %v348_v12 = vld.sshfl [vmem:[#allocation1 + $0x8] sm:$0xff pattern:$0x75316420] }
  0x33   : > { %350 = vrot.lane.b32.xlu1 %v347_v11, %s1264_s30  ;;  %437 = vst [vmem:[#allocation1] ss:$2 sm:$0xff] %v1349_v1  ;;  %352 = vrot.lane.b32.xlu2 %v348_v12, %s1264_s30 }
  0x38   : > { %v442_v14 = vld.sshfl [vmem:[#allocation1 + $0x10] sm:$0xff pattern:$0x75316420] }
  0x39   : > { %532 = vst [vmem:[#allocation1 + $0x10] ss:$2 sm:$0xff] %v525_v13 }
  0x3a   : > { %v441_v15 = vld.sshfl [vmem:[#allocation1 + $0x8] sm:$0xff pattern:$0x75316420]  ;;  %v440_v16 = vld.sshfl [vmem:[#allocation1] sm:$0xff pattern:$0x75316420] }
  0x3b   : > { %447 = vrot.lane.b32.xlu1 %v442_v14, %s1265_s4  ;;  %445 = vrot.lane.b32.xlu0 %v441_v15, %s1265_s4  ;;  %530 = vst [vmem:[#allocation1] ss:$2 sm:$0xff] %v1349_v1  ;;  %v1130_v14 = vld [vmem:[%s1501_s1 + $0x38] sm:$0xff] }
  0x3c   : > { %354 = vrot.lane.b32.xlu2 %v349_v10, %s1264_s30  ;;  %v1123_v10 = vld [vmem:[%s1501_s1 + $0x30] sm:$0xff]  ;;  %s1213_s30 = sshra.s32 %s1018_s28, 4  ;;  %s1214_s30 = int_to_ptr.hbm [resolvable:$true] %s1213_s30 }
  0x3d   : > { %p1220_p0 = scmp.lt.s32.totalorder %s1214_s30, %s1503_s3 }
  0x40   : > { %v535_v18 = vld.sshfl [vmem:[#allocation1 + $0x10] sm:$0xff pattern:$0x75316420] }
  0x41   : > { %625 = vst [vmem:[#allocation1 + $0x10] ss:$2 sm:$0xff] %v618_v17 }
  0x42   : > { %v534_v19 = vld.sshfl [vmem:[#allocation1 + $0x8] sm:$0xff pattern:$0x75316420]  ;;  %v533_v20 = vld.sshfl [vmem:[#allocation1] sm:$0xff pattern:$0x75316420] }
  0x43   : > { %540 = vrot.lane.b32.xlu0 %v535_v18, %s1266_s5  ;;  %536 = vrot.lane.b32.xlu1 %v533_v20, %s1266_s5  ;;  %623 = vst [vmem:[#allocation1] ss:$2 sm:$0xff] %v1349_v1  ;;  %v1137_v20 = vld [vmem:[%s1501_s1 + $0x40] sm:$0xff] }
  0x44   : > { %443 = vrot.lane.b32.xlu2 %v440_v16, %s1265_s4  ;;  %s1215_s4 = scalar_lea.hbm %s1214_s30, 24 }
  0x45   : > { %p1216_p11 = scmp.ne.s32.totalorder %s1214_s30, %s1215_s4 }
  0x47   : > { %p1217_p12 = pnand %p1216_p11, %p1330_p5 }
  0x48   : > { %v628_v22 = vld.sshfl [vmem:[#allocation1 + $0x10] sm:$0xff pattern:$0x75316420] }
  0x49   : > { %718 = vst [vmem:[#allocation1 + $0x10] ss:$2 sm:$0xff] %v711_v21  ;;  %p1218_p13 = pneg %p1217_p12 }
  0x4a   : > { %v627_v23 = vld.sshfl [vmem:[#allocation1 + $0x8] sm:$0xff pattern:$0x75316420]  ;;  %v626_v24 = vld.sshfl [vmem:[#allocation1] sm:$0xff pattern:$0x75316420] }
  0x4b   : > { %631 = vrot.lane.b32.xlu1 %v627_v23, %s1267_s6  ;;  %629 = vrot.lane.b32.xlu0 %v626_v24, %s1267_s6  ;;  %716 = vst [vmem:[#allocation1] ss:$2 sm:$0xff] %v1349_v1 }
  0x4c   : > { %538 = vrot.lane.b32.xlu2 %v534_v19, %s1266_s5 }
  0x50   : > { %v721_v26 = vld.sshfl [vmem:[#allocation1 + $0x10] sm:$0xff pattern:$0x75316420] }
  0x51   : > { %811 = vst [vmem:[#allocation1 + $0x10] ss:$2 sm:$0xff] %v804_v25 }
  0x52   : > { %v720_v27 = vld.sshfl [vmem:[#allocation1 + $0x8] sm:$0xff pattern:$0x75316420]  ;;  %v719_v28 = vld.sshfl [vmem:[#allocation1] sm:$0xff pattern:$0x75316420] }
  0x53   : > { %633 = vrot.lane.b32.xlu1 %v628_v22, %s1267_s6  ;;  %724 = vrot.lane.b32.xlu0 %v720_v27, %s1268_s7  ;;  %809 = vst [vmem:[#allocation1] ss:$2 sm:$0xff] %v1349_v1 }
  0x54   : > { %722 = vrot.lane.b32.xlu2 %v719_v28, %s1268_s7 }
  0x58   : > { %v814_v30 = vld.sshfl [vmem:[#allocation1 + $0x10] sm:$0xff pattern:$0x75316420] }
  0x59   : > { %904 = vst [vmem:[#allocation1 + $0x10] ss:$2 sm:$0xff] %v897_v29 }
  0x5a   : > { %v813_v31 = vld.sshfl [vmem:[#allocation1 + $0x8] sm:$0xff pattern:$0x75316420]  ;;  %v812_v32 = vld.sshfl [vmem:[#allocation1] sm:$0xff pattern:$0x75316420] }
  0x5b   : > { %819 = vrot.lane.b32.xlu1 %v814_v30, %s1269_s8  ;;  %817 = vrot.lane.b32.xlu0 %v813_v31, %s1269_s8  ;;  %902 = vst [vmem:[#allocation1] ss:$2 sm:$0xff] %v1349_v1 }
  0x5c   : > { %726 = vrot.lane.b32.xlu2 %v721_v26, %s1268_s7  ;;  %s1219_s7 = scalar_lea.hbm %s1503_s3, 48 }
  0x5d   : > { %p1221_p1 = scmp.lt.s32.totalorder %s1219_s7, %s1215_s4 }
  0x5f   : > { %p1222_p2 = por %p1221_p1, %p1220_p0 }
  0x60   : > { %v907_v33 = vld.sshfl [vmem:[#allocation1 + $0x10] sm:$0xff pattern:$0x75316420] }
  0x61   : > { %p1223_p3 = pnand %p1222_p2, %p1218_p13 }
  0x62   : > { %v905_v34 = vld.sshfl [vmem:[#allocation1] sm:$0xff pattern:$0x75316420]  ;;  %v906_v35 = vld.sshfl [vmem:[#allocation1 + $0x8] sm:$0xff pattern:$0x75316420] }
  0x63   : > { %912 = vrot.lane.b32.xlu0 %v907_v33, %s1270_s9  ;;  %908 = vrot.lane.b32.xlu1 %v905_v34, %s1270_s9 }
  0x64   : > { %815 = vrot.lane.b32.xlu2 %v812_v32, %s1269_s8 }
  0x6b   : > { %991 = vperm.xlu0 %1198, %v169_v62  }
  0x6c   : > { %910 = vrot.lane.b32.xlu2 %v906_v35, %s1270_s9 }
  0x8d   : > { %v353_v37 = vpop.permute.xlu2 %352 }
  0x93   : > { %v188_v39 = vpop.permute.xlu0 %187 }
  0x94   : > { %v186_v40 = vpop.permute.xlu1 %185  ;;  %1087 = vmatpush.msk.msra.mxu2 %vm196_vm0, %v188_v39 }
  0x95   : > { %v191_v41 = vsel %vm189_vm2, %v186_v40, %v188_v39  ;;  %1088 = vmatmul.msk.f32.vlgmr.msra.gmra.mxu2 %vm192_vm1, %v1082_v38 }
  0x96   : > { %1085 = vmatpush.msk.msra.mxu1 %vm196_vm0, %v191_v41  ;;  %v355_v42 = vpop.permute.xlu2 %354 }
  0x97   : > { %1086 = vmatmul.msk.f32.vlgmr.msra.gmra.mxu1 %vm192_vm1, %v1082_v38  ;;  %v358_v44 = vsel %vm356_vm3, %v353_v37, %v355_v42 }
  0x98   : > { %1098 = vmatpush.msk.msrb.mxu3 %vm196_vm0, %v358_v44  ;;  %1093 = vmatpush.msk.msrb.mxu1 %vm196_vm0, %v1354_v6 }
  0x99   : > { %1099 = vmatmul.msk.f32.vlgmr.msrb.gmra.mxu3 %vm192_vm1, %v1095_v43 }
  0x9b   : > { %v184_v45 = vpop.permute.xlu0 %183 }
  0x9c   : > { %v190_v46 = vsel %vm189_vm2, %v184_v45, %v186_v40 }
  0x9d   : > { %1083 = vmatpush.msk.msra.mxu0 %vm196_vm0, %v190_v46 }
  0x9e   : > { %1084 = vmatmul.msk.f32.vlgmr.msra.gmra.mxu0 %vm192_vm1, %v1082_v38  ;;  %v444_v47 = vpop.permute.xlu2 %443 }
  0x9f   : > { %1091 = vmatpush.msk.msrb.mxu0 %vm196_vm0, %v1358_v8  ;;  %1094 = vmatmul.msk.f32.vlgmr.msrb.gmra.mxu1 %vm192_vm1, %v172_v36 }
  0xa1   : > { %1100 = vmatpush.msk.msra.mxu0 %vm196_vm0, %v355_v42 }
  0xa5   : > { %v351_v48 = vpop.permute.xlu1 %350 }
  0xa6   : > { %v357_v49 = vsel %vm356_vm3, %v351_v48, %v353_v37  ;;  %1092 = vmatmul.msk.f32.vlgmr.msrb.gmra.mxu0 %vm192_vm1, %v172_v36  ;;  %v539_v50 = vpop.permute.xlu2 %538 }
  0xa7   : > { %1096 = vmatpush.msk.msrb.mxu2 %vm196_vm0, %v357_v49 }
  0xa8   : > { %1097 = vmatmul.msk.f32.vlgmr.msrb.gmra.mxu2 %vm192_vm1, %v1095_v43 }
  0xad   : > { %v448_v51 = vpop.permute.xlu1 %447  ;;  %v446_v52 = vpop.permute.xlu0 %445 }
  0xae   : > { %v451_v54 = vsel %vm449_vm4, %v446_v52, %v448_v51  ;;  %v450_v55 = vsel %vm449_vm4, %v444_v47, %v446_v52  ;;  %1107 = vmatpush.msk.msra.mxu3 %vm196_vm0, %v448_v51  ;;  %1101 = vmatmul.msk.f32.vlgmr.msra.gmra.mxu0 %vm192_vm1, %v1095_v43  ;;  %v723_v56 = vpop.permute.xlu2 %722 }
  0xaf   : > { %1103 = vmatpush.msk.msra.mxu1 %vm196_vm0, %v450_v55  ;;  %1105 = vmatpush.msk.msra.mxu2 %vm196_vm0, %v451_v54  ;;  %v295_v26 = vpop.f32.mrf.mxu3 }
  0xb0   : > { %1106 = vmatmul.msk.f32.vlgmr.msra.gmra.mxu2 %vm192_vm1, %v1102_v53  ;;  %1104 = vmatmul.msk.f32.vlgmr.msra.gmra.mxu1 %vm192_vm1, %v1102_v53 }
  0xb1   : > { %1108 = vmatmul.msk.f32.vlgmr.msra.gmra.mxu3 %vm192_vm1, %v1102_v53 }
  0xb5   : > { %v541_v57 = vpop.permute.xlu0 %540  ;;  %v537_v58 = vpop.permute.xlu1 %536 }
  0xb6   : > { %v544_v60 = vsel %vm542_vm5, %v539_v50, %v541_v57  ;;  %v543_v61 = vsel %vm542_vm5, %v537_v58, %v539_v50  ;;  %1114 = vmatpush.msk.msrb.mxu2 %vm196_vm0, %v541_v57  ;;  %v727_v4 = vpop.permute.xlu2 %726 }
  0xb7   : > { %1110 = vmatpush.msk.msrb.mxu0 %vm196_vm0, %v543_v61  ;;  %1112 = vmatpush.msk.msrb.mxu1 %vm196_vm0, %v544_v60 }
  0xb8   : > { %1115 = vmatmul.msk.f32.vlgmr.msrb.gmra.mxu2 %vm192_vm1, %v1109_v59  ;;  %1111 = vmatmul.msk.f32.vlgmr.msrb.gmra.mxu0 %vm192_vm1, %v1109_v59 }
  0xb9   : > { %1113 = vmatmul.msk.f32.vlgmr.msrb.gmra.mxu1 %vm192_vm1, %v1109_v59 }
  0xbd   : > { %v632_v0 = vpop.permute.xlu1 %631  ;;  %v630_v1 = vpop.permute.xlu0 %629 }
  0xbe   : > { %v636_v3 = vsel %vm635_vm6, %v630_v1, %v632_v0  ;;  %v816_v11 = vpop.permute.xlu2 %815 }
  0xbf   : > { %1117 = vmatpush.msk.msrb.mxu3 %vm196_vm0, %v636_v3 }
  0xc0   : > { %1118 = vmatmul.msk.f32.vlgmr.msrb.gmra.mxu3 %vm192_vm1, %v1116_v2 }
  0xc5   : > { %v634_v5 = vpop.permute.xlu1 %633  ;;  %v725_v6 = vpop.permute.xlu0 %724 }
  0xc6   : > { %v637_v7 = vsel %vm635_vm6, %v632_v0, %v634_v5  ;;  %v729_v8 = vsel %vm728_vm7, %v723_v56, %v725_v6  ;;  %v730_v9 = vsel %vm728_vm7, %v725_v6, %v727_v4  ;;  %1121 = vmatpush.msk.msra.mxu1 %vm196_vm0, %v634_v5  ;;  %v911_v17 = vpop.permute.xlu2 %910 }
  0xc7   : > { %1119 = vmatpush.msk.msra.mxu0 %vm196_vm0, %v637_v7  ;;  %1122 = vmatmul.msk.f32.vlgmr.msra.gmra.mxu1 %vm192_vm1, %v1116_v2 }
  0xc8   : > { %1124 = vmatpush.msk.msra.mxu2 %vm196_vm0, %v729_v8  ;;  %1126 = vmatpush.msk.msra.mxu3 %vm196_vm0, %v730_v9 }
  0xc9   : > { %1120 = vmatmul.msk.f32.vlgmr.msra.gmra.mxu0 %vm192_vm1, %v1116_v2  ;;  %1125 = vmatmul.msk.f32.vlgmr.msra.gmra.mxu2 %vm192_vm1, %v1123_v10 }
  0xca   : > { %1127 = vmatmul.msk.f32.vlgmr.msra.gmra.mxu3 %vm192_vm1, %v1123_v10  ;;  %1128 = vmatpush.msk.msrb.mxu0 %vm196_vm0, %v727_v4 }
  0xcd   : > { %v820_v12 = vpop.permute.xlu1 %819  ;;  %v818_v13 = vpop.permute.xlu0 %817 }
  0xce   : > { %v823_v15 = vsel %vm821_vm8, %v818_v13, %v820_v12  ;;  %v822_v16 = vsel %vm821_vm8, %v816_v11, %v818_v13  ;;  %1135 = vmatpush.msk.msrb.mxu3 %vm196_vm0, %v820_v12 }
  0xcf   : > { %1131 = vmatpush.msk.msrb.mxu1 %vm196_vm0, %v822_v16  ;;  %1133 = vmatpush.msk.msrb.mxu2 %vm196_vm0, %v823_v15 }
  0xd0   : > { %1132 = vmatmul.msk.f32.vlgmr.msrb.gmra.mxu1 %vm192_vm1, %v1130_v14 }
  0xd1   : > { %1129 = vmatmul.msk.f32.vlgmr.msrb.gmra.mxu0 %vm192_vm1, %v1123_v10  ;;  %1134 = vmatmul.msk.f32.vlgmr.msrb.gmra.mxu2 %vm192_vm1, %v1130_v14 }
  0xd2   : > { %1136 = vmatmul.msk.f32.vlgmr.msrb.gmra.mxu3 %vm192_vm1, %v1130_v14 }
  0xd5   : > { %v913_v18 = vpop.permute.xlu0 %912  ;;  %v909_v19 = vpop.permute.xlu1 %908 }
  0xd6   : > { %v916_v21 = vsel %vm914_vm9, %v911_v17, %v913_v18  ;;  %v915_v22 = vsel %vm914_vm9, %v909_v19, %v911_v17  ;;  %1142 = vmatpush.msk.msra.mxu2 %vm196_vm0, %v913_v18 }
  0xd7   : > { %1138 = vmatpush.msk.msra.mxu0 %vm196_vm0, %v915_v22  ;;  %1140 = vmatpush.msk.msra.mxu1 %vm196_vm0, %v916_v21 }
  0xd8   : > { %1141 = vmatmul.msk.f32.vlgmr.msra.gmra.mxu1 %vm192_vm1, %v1137_v20 }
  0xd9   : > { %1139 = vmatmul.msk.f32.vlgmr.msra.gmra.mxu0 %vm192_vm1, %v1137_v20  ;;  %1143 = vmatmul.msk.f32.vlgmr.msra.gmra.mxu2 %vm192_vm1, %v1137_v20 }
  0xdd   : > { %v992_v2 = vpop.permute.xlu0 %991 }
 0x114   : > { %v240_v23 = vpop.f32.mrf.mxu1 }
 0x118   : > { %v260_v25 = vpop.f32.mrf.mxu2 }
 0x11b   : > { %v220_v24 = vpop.f32.mrf.mxu0 }
 0x11c   : > { %v335_v27 = vpop.f32.mrf.mxu1  ;;  %v405_v30 = vpop.f32.mrf.mxu3  ;;  %v296_v37 = vadd.f32 %v295_v26, %v220_v24 }
 0x11d   : > { %v336_v48 = vadd.f32 %v335_v27, %v260_v25 }
 0x123   : > { %v315_v28 = vpop.f32.mrf.mxu0 }
 0x124   : > { %v316_v41 = vadd.f32 %v315_v28, %v240_v23 }
 0x126   : > { %v429_v44 = vadd.f32 %v405_v30, %v316_v41 }
 0x12b   : > { %v385_v29 = vpop.f32.mrf.mxu2  ;;  %v425_v32 = vpop.f32.mrf.mxu0 }
 0x12c   : > { %v428_v43 = vadd.f32 %v385_v29, %v296_v37  ;;  %v430_v55 = vadd.f32 %v425_v32, %v336_v48 }
 0x12d   : > { %v478_v31 = vpop.f32.mrf.mxu1 }
 0x12e   : > { %v521_v45 = vadd.f32 %v478_v31, %v428_v43 }
 0x133   : > { %v498_v33 = vpop.f32.mrf.mxu2 }
 0x134   : > { %v518_v34 = vpop.f32.mrf.mxu3  ;;  %v522_v46 = vadd.f32 %v498_v33, %v429_v44 }
 0x135   : > { %v571_v36 = vpop.f32.mrf.mxu0  ;;  %v523_v58 = vadd.f32 %v518_v34, %v430_v55 }
 0x136   : > { %v591_v35 = vpop.f32.mrf.mxu1  ;;  %v614_v49 = vadd.f32 %v571_v36, %v521_v45 }
 0x137   : > { %v615_v53 = vadd.f32 %v591_v35, %v522_v46 }
 0x13b   : > { %v611_v38 = vpop.f32.mrf.mxu2 }
 0x13c   : > { %v616_v61 = vadd.f32 %v611_v38, %v523_v58 }
 0x143   : > { %v664_v39 = vpop.f32.mrf.mxu3 }
 0x144   : > { %v704_v40 = vpop.f32.mrf.mxu1  ;;  %v707_v54 = vadd.f32 %v664_v39, %v614_v49 }
 0x145   : > { %v709_v3 = vadd.f32 %v704_v40, %v616_v61 }
 0x146   : > { %v684_v42 = vpop.f32.mrf.mxu0 }
 0x147   : > { %v708_v56 = vadd.f32 %v684_v42, %v615_v53 }
 0x14c   : > { %v757_v47 = vpop.f32.mrf.mxu2 }
 0x14d   : > { %v850_v50 = vpop.f32.mrf.mxu1  ;;  %v777_v51 = vpop.f32.mrf.mxu3  ;;  %v800_v57 = vadd.f32 %v757_v47, %v707_v54 }
 0x14e   : > { %v797_v52 = vpop.f32.mrf.mxu0  ;;  %v801_v59 = vadd.f32 %v777_v51, %v708_v56 }
 0x14f   : > { %v893_v62 = vadd.f32 %v850_v50, %v800_v57  ;;  %v802_v7 = vadd.f32 %v797_v52, %v709_v3 }
 0x154   : > { %v870_v60 = vpop.f32.mrf.mxu2 }
 0x155   : > { %v894_v63 = vadd.f32 %v870_v60, %v801_v59  ;;  %v963_v0 = vpop.f32.mrf.mxu1  ;;  %v890_v6 = vpop.f32.mrf.mxu3 }
 0x156   : > { %v943_v1 = vpop.f32.mrf.mxu0  ;;  %v895_v10 = vadd.f32 %v890_v6, %v802_v7 }
 0x157   : > { %v986_v4 = vadd.f32 %v943_v1, %v893_v62  ;;  %v987_v5 = vadd.f32 %v963_v0, %v894_v63 }
 0x159   : > { %v994_v8 = vadd.f32 %v992_v2, %v986_v4  ;;  %v995_v9 = vadd.f32 %v992_v2, %v987_v5 }
 0x15b   : > { %997 = vst [vmem:[%s163_s27] sm:$0xff] %v994_v8 }
 0x15c   : > { %998 = vst [vmem:[%s163_s27 + $0x8] sm:$0xff] %v995_v9  ;;  %v983_v11 = vpop.f32.mrf.mxu2 }
 0x15d   : > { %v988_v12 = vadd.f32 %v983_v11, %v895_v10 }
 0x15f   : > { %v996_v13 = vadd.f32 %v992_v2, %v988_v12 }
 0x161   : > { %1000 = vst.msk [vmem:[%s163_s27 + $0x10] sm:$0xff] %vm999_vm10, %v996_v13 }
 0x162   : > { %1226 = shalt.err (!%p1223_p3)
}
 0x163   : > { %1150 = dma.vmem_to_hbm [thread:$0]  (%p1330_p5), %s1016_s16, 384, %s1018_s28, %s1002_s29  }
 0x164 PF: > { %p1156_p4 = scmp.ge.s32.totalorder %s1261_s15, 2  ;;  %s1029_s10 = sand.u32 1, %s1249_s12  }
 0x165   : > { %s1030_s11 = scalar_lea.sflag [#allocation3], %s1029_s10 }
 0x166   : > { %p1153_p7 = pnand %p1156_p4, %p1334_p6 }
 0x168   : > { %p1154_p8 = pneg %p1153_p7 }
 0x16a   : > { %1244 = dma.done.wait (%p1154_p8), %s1030_s11, 384  }
 0x16b   : > { %1246 = vsyncadd (%p1154_p8), %s1030_s11, 4294966912  ;;  %p13_p9 = scmp.ge.s32.totalorder %s1317_s18, 4   ;;  %s1506_s12 = smov %s1253_s13 }
 0x16c   : > { %s1507_s13 = smov %s1257_s14  ;;  %s1508_s14 = smov %s1328_s21 }
 0x16d   : > { %s1509_s15 = smov %s1317_s18  ;;  %15 = sbr.rel (!%p13_p9) target bundleno = 3 (0x3), region = 84 }
 0x172   :  { %1036 = vsyncpa [#allocation3], 1 }
 0x173   :  { %1038 = vsyncpa [#allocation3 + $0x1], 1 }

</bundles_post_ra>
